<compile_context>
chip_gen: v6e
topology: v6e:2x2x1
jax: 0.10.0
libtpu: 0.0.40
codegen_flags: <defaults>
</compile_context>

<pallas_src>
import functools

import jax
import jax.numpy as jnp
from jax import lax
from jax.experimental import pallas as pl
from jax.experimental.pallas import tpu as pltpu

LANE = 128
_EPS_NORM = 1e-12   # F.normalize eps
_EPS_BN = 1e-5      # BatchNorm eps


def _round_up(x, m):
    return (x + m - 1) // m * m


# ----------------------------------------------------------------------------
# Fused forward kernel
# ----------------------------------------------------------------------------
def _make_fused_kernel(num_layers, temp, lam, lambda_loss, mxu_bf16):
    sqrt_inv_temp = (1.0 / float(temp)) ** 0.5
    lam = float(lam)
    lambda_loss = float(lambda_loss)

    def kernel(adj_ref, feat_ref, w_ref, b_ref, loss_ref):
        adj = adj_ref[...]            # (N, N) f32 symmetric, no self-loops
        feat = feat_ref[...]          # (N, P) f32, feature dim zero-padded to 128

        def bias(i):                  # (1, P) row of the packed bias buffer
            return b_ref[pl.ds(i, 1), :]

        # --- GraphConv(norm='both') normalization D^-1/2 A D^-1/2 -------------
        # (both orientations of deg are reused below for the self-loop term)
        deg_r = jnp.sum(adj, axis=-1, keepdims=True)          # (N, 1)
        deg_c = jnp.sum(adj, axis=0, keepdims=True)           # (1, N) == deg_r^T
        dinv_r = lax.rsqrt(jnp.maximum(deg_r, 1.0))
        dinv_c = lax.rsqrt(jnp.maximum(deg_c, 1.0))
        a_norm = dinv_r * adj * dinv_c                         # (N, N), reused by every layer

        # --- h = GCN encoder (ReLU on all but last layer) ----------------------
        # All dims padded to P=128 so both matmul associations cost the same.
        h = feat
        for i in range(num_layers):
            h = jnp.dot(a_norm,
                        jnp.dot(h, w_ref[i], preferred_element_type=jnp.float32),
                        preferred_element_type=jnp.float32) + bias(i)
            if i < num_layers - 1:
                h = jnp.maximum(h, 0.0)

        # --- trans_feature = target MLP encoder (graph ignored), train-mode BN -
        t = jnp.dot(feat, w_ref[num_layers],
                    preferred_element_type=jnp.float32) + bias(num_layers)
        mean = jnp.mean(t, axis=0, keepdims=True)
        var = jnp.mean((t - mean) ** 2, axis=0, keepdims=True)   # biased batch var
        t = (t - mean) * lax.rsqrt(var + _EPS_BN)
        t = jnp.maximum(t * bias(num_layers + 1) + bias(num_layers + 2), 0.0)
        trans = jnp.dot(t, w_ref[num_layers + 1],
                        preferred_element_type=jnp.float32) + bias(num_layers + 3)

        # --- projector (num_MLP = 1 -> single Linear) ---------------------------
        proj = jnp.dot(trans, w_ref[num_layers + 2],
                       preferred_element_type=jnp.float32) + bias(num_layers + 4)

        # --- contrastive scores --------------------------------------------------
        # F.normalize with 1/temp folded once into z and q (sqrt each), so none
        # of the (N,N) similarity matrices needs an extra O(N^2) scale.
        z = h * (sqrt_inv_temp /
                 jnp.maximum(jnp.sqrt(jnp.sum(h * h, axis=-1, keepdims=True)), _EPS_NORM))
        q = proj * (sqrt_inv_temp /
                    jnp.maximum(jnp.sqrt(jnp.sum(proj * proj, axis=-1, keepdims=True)),
                                _EPS_NORM))

        if mxu_bf16:
            # bf16 MXU operands (unit-norm values), f32 accumulation.
            zb = z.astype(jnp.bfloat16)
            qb = q.astype(jnp.bfloat16)
            adjb = adj.astype(jnp.bfloat16)   # 0/1 exact in bf16
        else:
            zb, qb, adjb = z, q, adj

        deg_sl_r = deg_r + 1.0                 # self-looped in-degree (>= 1)
        deg_sl_c = deg_c + 1.0
        # approx reciprocal (EUP slot, ~1e-3 rel err) — fine for training;
        # use approx=False for tight-tolerance parity with a PyTorch reference.
        inv_deg_r = pl.reciprocal(deg_sl_r, approx=True)       # (N, 1)
        inv_deg_c = pl.reciprocal(deg_sl_c, approx=True)       # (1, N)

        # pos[v] = mean_{u->v in A+I} z_u . q_v / temp ; self-loop folded as "+ z"
        agg = jnp.dot(adjb, zb, preferred_element_type=jnp.float32) + z     # (N, P)
        pos = jnp.sum(agg * q, axis=-1, keepdims=True) * inv_deg_r          # (N, 1)

        dn = (((1,), (1,)), ((), ()))
        # ns1[v] = sum_j exp(z_v . z_j / temp):  s_zz is symmetric, so both
        # orientations come from one exp'd matrix (no relayout, no extra exp).
        e_zz = jnp.exp(lax.dot_general(zb, zb, dn, preferred_element_type=jnp.float32))
        ns1_c = jnp.sum(e_zz, axis=-1, keepdims=True)                        # (N, 1)
        ns1_r = jnp.sum(e_zz, axis=0, keepdims=True)                         # (1, N)
        # ns2[u] = lam * sum_j exp(z_u . q_j / temp), built directly as a row.
        e_qz = jnp.exp(lax.dot_general(qb, zb, dn, preferred_element_type=jnp.float32))
        ns2_r = lam * jnp.sum(e_qz, axis=0, keepdims=True)                   # (1, N)

        # edge u->v message: log(ns1[v] + ns2[u]); neg[v] = mean over incoming
        # edges of the self-looped graph.  Self-loop handled as a separate
        # (1,N) diagonal term — no A+I / eye / iota materialization.
        msg = jnp.log(ns1_c + ns2_r)                                         # (N, N)
        neg_adj = jnp.sum(adj * msg, axis=-1, keepdims=True) * inv_deg_r     # (N, 1)
        neg_self = jnp.log(ns1_r + ns2_r) * inv_deg_c                        # (1, N)

        # loss = mean(-pos + lambda * neg); the mean splits over the two neg pieces.
        loss_ref[...] = (-jnp.mean(pos, keepdims=True)
                         + lambda_loss * (jnp.mean(neg_adj, keepdims=True)
                                          + jnp.mean(neg_self, keepdims=True)))

    return kernel


# ----------------------------------------------------------------------------
# Parameter packing: pad everything to lane width and concatenate
# ----------------------------------------------------------------------------
def _pad2(x, rows, cols):
    r, c = x.shape
    return jnp.pad(x.astype(jnp.float32), ((0, rows - r), (0, cols - c)))


def pack_params(params):
    """Zero-pad every parameter to the 128-lane width and concatenate the dozen
    small tensors into one weight pack (L+3, P, P) and one bias pack (8, P):
    2 lane-dense pallas inputs instead of 14 tiny ones."""
    gcn_w = list(params["gcn_w"])
    gcn_b = list(params["gcn_b"])
    weights = gcn_w + [params["mlp_w1"], params["mlp_w2"], params["proj_w"]]
    biases = gcn_b + [params["mlp_b1"], params["mlp_g"], params["mlp_beta"],
                      params["mlp_b2"], params["proj_b"]]
    p = _round_up(max(max(w.shape[0], w.shape[1]) for w in weights), LANE)
    w_pack = jnp.stack([_pad2(w, p, p) for w in weights])            # (L+3, P, P)
    b_pack = jnp.concatenate([_pad2(b, 1, p) for b in biases], axis=0)
    rb = _round_up(b_pack.shape[0], 8)                               # sublane align
    b_pack = jnp.pad(b_pack, ((0, rb - b_pack.shape[0]), (0, 0)))    # (8, P) for L=2
    return {"w_pack": w_pack, "b_pack": b_pack}


# ----------------------------------------------------------------------------
# pallas_call wrapper (single fused launch, full-array VMEM blocks)
# ----------------------------------------------------------------------------
def _full_spec(shape):
    nd = len(shape)
    return pl.BlockSpec(tuple(shape), lambda i, _n=nd: (0,) * _n)


def model_forward(packed, adj, feat, *, temp=0.5, lam=0.001, lambda_loss=1.0,
                  mxu_bf16=True):
    w_pack = packed["w_pack"]
    b_pack = packed["b_pack"]
    num_layers = w_pack.shape[0] - 3          # static
    p = w_pack.shape[-1]                      # static padded width (128)

    n, in_dim = feat.shape
    feat_p = jnp.pad(feat.astype(jnp.float32), ((0, 0), (0, p - in_dim)))
    adj = adj.astype(jnp.float32)

    inputs = [adj, feat_p, w_pack, b_pack]

    # Advisory cost estimate so XLA schedules the fused custom call sensibly.
    flops = (2 * n * p * p * (num_layers + 3)        # dense matmuls (padded)
             + 2 * n * n * p * (num_layers + 3)      # A-matmuls + score dots
             + 14 * n * n)                           # elementwise O(N^2)
    transcendentals = 3 * n * n + 10 * n             # exp/exp/log + rsqrt/recip
    bytes_in = sum(int(x.size) * x.dtype.itemsize for x in inputs)
    cost = pl.CostEstimate(flops=int(flops),
                           transcendentals=int(transcendentals),
                           bytes_accessed=int(bytes_in + 4))

    kernel = _make_fused_kernel(num_layers, temp, lam, lambda_loss, mxu_bf16)
    loss = pl.pallas_call(
        kernel,
        grid=(1,),
        in_specs=[_full_spec(x.shape) for x in inputs],
        out_specs=_full_spec((1, 1)),
        out_shape=jax.ShapeDtypeStruct((1, 1), jnp.float32),
        compiler_params=pltpu.CompilerParams(
            dimension_semantics=("arbitrary",),
            vmem_limit_bytes=32 * 1024 * 1024),
        cost_estimate=cost,
    )(*inputs)
    return loss[0, 0]


# ----------------------------------------------------------------------------
# Parameters (natural / unpadded layout, packed once by pack_params)
# ----------------------------------------------------------------------------
def init_params(key, in_dim, hid_dim, out_dim, num_layers):
    ks = list(jax.random.split(key, 16))

    def w(k, i, o):
        return jax.random.normal(k, (i, o), jnp.float32) * 0.1

    def b(k, o):
        return jax.random.normal(k, (1, o), jnp.float32) * 0.1

    params = {}
    # GCN encoder: GraphConv(in,hid), [GraphConv(hid,hid)]*(L-2), GraphConv(hid,out)
    dims = [in_dim] + [hid_dim] * (num_layers - 1) + [out_dim]
    params["gcn_w"] = [w(ks[i], dims[i], dims[i + 1]) for i in range(num_layers)]
    params["gcn_b"] = [b(ks[4 + i], dims[i + 1]) for i in range(num_layers)]
    # target MLP encoder: Linear(in,hid) -> BN -> ReLU -> Linear(hid,out)
    params["mlp_w1"] = w(ks[8], in_dim, hid_dim)
    params["mlp_b1"] = b(ks[9], hid_dim)
    params["mlp_g"] = jnp.ones((1, hid_dim), jnp.float32)
    params["mlp_beta"] = jnp.zeros((1, hid_dim), jnp.float32)
    params["mlp_w2"] = w(ks[10], hid_dim, out_dim)
    params["mlp_b2"] = b(ks[11], out_dim)
    # projector MLP_generator(hid,hid,1): single Linear(hid,hid) (needs out_dim == hid_dim)
    params["proj_w"] = w(ks[12], hid_dim, hid_dim)
    params["proj_b"] = b(ks[13], hid_dim)
    return params


# ----------------------------------------------------------------------------
if __name__ == "__main__":
    N, IN_DIM, HID_DIM, OUT_DIM, NUM_LAYERS = 16, 16, 32, 32, 2
    TEMP, LAM, LAMBDA_LOSS = 0.5, 0.001, 1.0

    key = jax.random.PRNGKey(0)
    k_feat, k_param = jax.random.split(key)

    # synthetic symmetric graph (ring + chords), no self-loops, all degrees >= 1
    idx = jnp.arange(N)
    adj = jnp.zeros((N, N), jnp.float32)
    adj = adj.at[idx, (idx + 1) % N].set(1.0)
    adj = adj.at[(idx + 1) % N, idx].set(1.0)
    adj = adj.at[idx, (idx + 3) % N].set(1.0)
    adj = adj.at[(idx + 3) % N, idx].set(1.0)

    feat = jax.random.normal(k_feat, (N, IN_DIM), jnp.float32)
    params = init_params(k_param, IN_DIM, HID_DIM, OUT_DIM, NUM_LAYERS)
    packed = pack_params(params)     # pad + pack once, outside the jitted forward

    fwd = jax.jit(functools.partial(model_forward,
                                    temp=TEMP, lam=LAM, lambda_loss=LAMBDA_LOSS))
    loss = fwd(packed, adj, feat)
    loss = jax.block_until_ready(loss)
    assert jnp.isfinite(loss), f"non-finite loss: {loss}"
    print("KERNEL_OK")
</pallas_src>

<mosaic_0001>
module attributes {stable_mosaic.version = 11 : i64} {
  func.func @kernel(%arg0: i32, %arg1: memref<16x16xf32, #tpu.memory_space<vmem>>, %arg2: memref<16x128xf32, #tpu.memory_space<vmem>>, %arg3: memref<5x128x128xf32, #tpu.memory_space<vmem>>, %arg4: memref<8x128xf32, #tpu.memory_space<vmem>>, %arg5: memref<1x1xf32, #tpu.memory_space<vmem>>) attributes {dimension_semantics = [#tpu.dimension_semantics<arbitrary>], iteration_bounds = array<i64: 1>, scalar_prefetch = 0 : i64, scratch_operands = 0 : i64, tpu.core_type = #tpu.core_type<tc>, window_params = [{pipeline_mode = #tpu.pipeline_mode<synchronous>, transform_indices = @transform_0, window_bounds = array<i64: 16, 16>}, {pipeline_mode = #tpu.pipeline_mode<synchronous>, transform_indices = @transform_1, window_bounds = array<i64: 16, 128>}, {pipeline_mode = #tpu.pipeline_mode<synchronous>, transform_indices = @transform_2, window_bounds = array<i64: 5, 128, 128>}, {pipeline_mode = #tpu.pipeline_mode<synchronous>, transform_indices = @transform_3, window_bounds = array<i64: 8, 128>}, {pipeline_mode = #tpu.pipeline_mode<synchronous>, transform_indices = @transform_4, window_bounds = array<i64: 1, 1>}]} {
    %c0 = arith.constant 0 : index
    %c0_0 = arith.constant 0 : index
    %0 = vector.load %arg1[%c0, %c0_0] : memref<16x16xf32, #tpu.memory_space<vmem>>, vector<16x16xf32>
    %c0_1 = arith.constant 0 : index
    %c0_2 = arith.constant 0 : index
    %1 = vector.load %arg2[%c0_1, %c0_2] : memref<16x128xf32, #tpu.memory_space<vmem>>, vector<16x128xf32>
    %cst = arith.constant dense<0.000000e+00> : vector<16xf32>
    %2 = vector.multi_reduction <add>, %0, %cst [1] : vector<16x16xf32> to vector<16xf32>
    %3 = vector.shape_cast %2 : vector<16xf32> to vector<16x1xf32>
    %cst_3 = arith.constant dense<0.000000e+00> : vector<16xf32>
    %4 = vector.multi_reduction <add>, %0, %cst_3 [0] : vector<16x16xf32> to vector<16xf32>
    %5 = vector.shape_cast %4 : vector<16xf32> to vector<1x16xf32>
    %cst_4 = arith.constant 1.000000e+00 : f32
    %6 = vector.broadcast %cst_4 : f32 to vector<16x1xf32>
    %7 = arith.maximumf %3, %6 : vector<16x1xf32>
    %8 = math.rsqrt %7 : vector<16x1xf32>
    %cst_5 = arith.constant 1.000000e+00 : f32
    %9 = vector.broadcast %cst_5 : f32 to vector<1x16xf32>
    %10 = arith.maximumf %5, %9 : vector<1x16xf32>
    %11 = math.rsqrt %10 : vector<1x16xf32>
    %12 = vector.broadcast %8 : vector<16x1xf32> to vector<16x16xf32>
    %13 = arith.mulf %12, %0 : vector<16x16xf32>
    %14 = vector.broadcast %11 : vector<1x16xf32> to vector<16x16xf32>
    %15 = arith.mulf %13, %14 : vector<16x16xf32>
    %c0_6 = arith.constant 0 : index
    %c0_7 = arith.constant 0 : index
    %c0_8 = arith.constant 0 : index
    %16 = vector.load %arg3[%c0_6, %c0_7, %c0_8] : memref<5x128x128xf32, #tpu.memory_space<vmem>>, vector<1x128x128xf32>
    %17 = vector.shape_cast %16 : vector<1x128x128xf32> to vector<128x128xf32>
    %cst_9 = arith.constant dense<0.000000e+00> : vector<16x128xf32>
    %18 = tpu.matmul %1, %17, %cst_9 {dimension_numbers = #tpu.dot_dimension_numbers<[1], [0], [0], [1], [0, 0, 1, 1], [], []>} : vector<16x128xf32>, vector<128x128xf32>, vector<16x128xf32> -> vector<16x128xf32>
    %cst_10 = arith.constant dense<0.000000e+00> : vector<16x128xf32>
    %19 = tpu.matmul %15, %18, %cst_10 {dimension_numbers = #tpu.dot_dimension_numbers<[1], [0], [0], [1], [0, 0, 1, 1], [], []>} : vector<16x16xf32>, vector<16x128xf32>, vector<16x128xf32> -> vector<16x128xf32>
    %c0_11 = arith.constant 0 : index
    %c0_12 = arith.constant 0 : index
    %20 = vector.load %arg4[%c0_11, %c0_12] : memref<8x128xf32, #tpu.memory_space<vmem>>, vector<1x128xf32>
    %21 = vector.broadcast %20 : vector<1x128xf32> to vector<16x128xf32>
    %22 = arith.addf %19, %21 : vector<16x128xf32>
    %cst_13 = arith.constant 0.000000e+00 : f32
    %23 = vector.broadcast %cst_13 : f32 to vector<16x128xf32>
    %24 = arith.maximumf %22, %23 : vector<16x128xf32>
    %c1 = arith.constant 1 : index
    %c0_14 = arith.constant 0 : index
    %c0_15 = arith.constant 0 : index
    %25 = vector.load %arg3[%c1, %c0_14, %c0_15] : memref<5x128x128xf32, #tpu.memory_space<vmem>>, vector<1x128x128xf32>
    %26 = vector.shape_cast %25 : vector<1x128x128xf32> to vector<128x128xf32>
    %cst_16 = arith.constant dense<0.000000e+00> : vector<16x128xf32>
    %27 = tpu.matmul %24, %26, %cst_16 {dimension_numbers = #tpu.dot_dimension_numbers<[1], [0], [0], [1], [0, 0, 1, 1], [], []>} : vector<16x128xf32>, vector<128x128xf32>, vector<16x128xf32> -> vector<16x128xf32>
    %cst_17 = arith.constant dense<0.000000e+00> : vector<16x128xf32>
    %28 = tpu.matmul %15, %27, %cst_17 {dimension_numbers = #tpu.dot_dimension_numbers<[1], [0], [0], [1], [0, 0, 1, 1], [], []>} : vector<16x16xf32>, vector<16x128xf32>, vector<16x128xf32> -> vector<16x128xf32>
    %c1_18 = arith.constant 1 : index
    %c0_19 = arith.constant 0 : index
    %29 = vector.load %arg4[%c1_18, %c0_19] : memref<8x128xf32, #tpu.memory_space<vmem>>, vector<1x128xf32>
    %30 = vector.broadcast %29 : vector<1x128xf32> to vector<16x128xf32>
    %31 = arith.addf %28, %30 : vector<16x128xf32>
    %c2 = arith.constant 2 : index
    %c0_20 = arith.constant 0 : index
    %c0_21 = arith.constant 0 : index
    %32 = vector.load %arg3[%c2, %c0_20, %c0_21] : memref<5x128x128xf32, #tpu.memory_space<vmem>>, vector<1x128x128xf32>
    %33 = vector.shape_cast %32 : vector<1x128x128xf32> to vector<128x128xf32>
    %cst_22 = arith.constant dense<0.000000e+00> : vector<16x128xf32>
    %34 = tpu.matmul %1, %33, %cst_22 {dimension_numbers = #tpu.dot_dimension_numbers<[1], [0], [0], [1], [0, 0, 1, 1], [], []>} : vector<16x128xf32>, vector<128x128xf32>, vector<16x128xf32> -> vector<16x128xf32>
    %c2_23 = arith.constant 2 : index
    %c0_24 = arith.constant 0 : index
    %35 = vector.load %arg4[%c2_23, %c0_24] : memref<8x128xf32, #tpu.memory_space<vmem>>, vector<1x128xf32>
    %36 = vector.broadcast %35 : vector<1x128xf32> to vector<16x128xf32>
    %37 = arith.addf %34, %36 : vector<16x128xf32>
    %cst_25 = arith.constant dense<0.000000e+00> : vector<128xf32>
    %38 = vector.multi_reduction <add>, %37, %cst_25 [0] : vector<16x128xf32> to vector<128xf32>
    %39 = vector.shape_cast %38 : vector<128xf32> to vector<1x128xf32>
    %cst_26 = arith.constant 1.600000e+01 : f32
    %40 = vector.broadcast %cst_26 : f32 to vector<1x128xf32>
    %41 = arith.divf %39, %40 : vector<1x128xf32>
    %42 = vector.broadcast %41 : vector<1x128xf32> to vector<16x128xf32>
    %43 = arith.subf %37, %42 : vector<16x128xf32>
    %44 = arith.mulf %43, %43 : vector<16x128xf32>
    %cst_27 = arith.constant dense<0.000000e+00> : vector<128xf32>
    %45 = vector.multi_reduction <add>, %44, %cst_27 [0] : vector<16x128xf32> to vector<128xf32>
    %46 = vector.shape_cast %45 : vector<128xf32> to vector<1x128xf32>
    %cst_28 = arith.constant 1.600000e+01 : f32
    %47 = vector.broadcast %cst_28 : f32 to vector<1x128xf32>
    %48 = arith.divf %46, %47 : vector<1x128xf32>
    %49 = vector.broadcast %41 : vector<1x128xf32> to vector<16x128xf32>
    %50 = arith.subf %37, %49 : vector<16x128xf32>
    %cst_29 = arith.constant 9.99999974E-6 : f32
    %51 = vector.broadcast %cst_29 : f32 to vector<1x128xf32>
    %52 = arith.addf %48, %51 : vector<1x128xf32>
    %53 = math.rsqrt %52 : vector<1x128xf32>
    %54 = vector.broadcast %53 : vector<1x128xf32> to vector<16x128xf32>
    %55 = arith.mulf %50, %54 : vector<16x128xf32>
    %c3 = arith.constant 3 : index
    %c0_30 = arith.constant 0 : index
    %56 = vector.load %arg4[%c3, %c0_30] : memref<8x128xf32, #tpu.memory_space<vmem>>, vector<1x128xf32>
    %57 = vector.broadcast %56 : vector<1x128xf32> to vector<16x128xf32>
    %58 = arith.mulf %55, %57 : vector<16x128xf32>
    %c4 = arith.constant 4 : index
    %c0_31 = arith.constant 0 : index
    %59 = vector.load %arg4[%c4, %c0_31] : memref<8x128xf32, #tpu.memory_space<vmem>>, vector<1x128xf32>
    %60 = vector.broadcast %59 : vector<1x128xf32> to vector<16x128xf32>
    %61 = arith.addf %58, %60 : vector<16x128xf32>
    %cst_32 = arith.constant 0.000000e+00 : f32
    %62 = vector.broadcast %cst_32 : f32 to vector<16x128xf32>
    %63 = arith.maximumf %61, %62 : vector<16x128xf32>
    %c3_33 = arith.constant 3 : index
    %c0_34 = arith.constant 0 : index
    %c0_35 = arith.constant 0 : index
    %64 = vector.load %arg3[%c3_33, %c0_34, %c0_35] : memref<5x128x128xf32, #tpu.memory_space<vmem>>, vector<1x128x128xf32>
    %65 = vector.shape_cast %64 : vector<1x128x128xf32> to vector<128x128xf32>
    %cst_36 = arith.constant dense<0.000000e+00> : vector<16x128xf32>
    %66 = tpu.matmul %63, %65, %cst_36 {dimension_numbers = #tpu.dot_dimension_numbers<[1], [0], [0], [1], [0, 0, 1, 1], [], []>} : vector<16x128xf32>, vector<128x128xf32>, vector<16x128xf32> -> vector<16x128xf32>
    %c5 = arith.constant 5 : index
    %c0_37 = arith.constant 0 : index
    %67 = vector.load %arg4[%c5, %c0_37] : memref<8x128xf32, #tpu.memory_space<vmem>>, vector<1x128xf32>
    %68 = vector.broadcast %67 : vector<1x128xf32> to vector<16x128xf32>
    %69 = arith.addf %66, %68 : vector<16x128xf32>
    %c4_38 = arith.constant 4 : index
    %c0_39 = arith.constant 0 : index
    %c0_40 = arith.constant 0 : index
    %70 = vector.load %arg3[%c4_38, %c0_39, %c0_40] : memref<5x128x128xf32, #tpu.memory_space<vmem>>, vector<1x128x128xf32>
    %71 = vector.shape_cast %70 : vector<1x128x128xf32> to vector<128x128xf32>
    %cst_41 = arith.constant dense<0.000000e+00> : vector<16x128xf32>
    %72 = tpu.matmul %69, %71, %cst_41 {dimension_numbers = #tpu.dot_dimension_numbers<[1], [0], [0], [1], [0, 0, 1, 1], [], []>} : vector<16x128xf32>, vector<128x128xf32>, vector<16x128xf32> -> vector<16x128xf32>
    %c6 = arith.constant 6 : index
    %c0_42 = arith.constant 0 : index
    %73 = vector.load %arg4[%c6, %c0_42] : memref<8x128xf32, #tpu.memory_space<vmem>>, vector<1x128xf32>
    %74 = vector.broadcast %73 : vector<1x128xf32> to vector<16x128xf32>
    %75 = arith.addf %72, %74 : vector<16x128xf32>
    %76 = arith.mulf %31, %31 : vector<16x128xf32>
    %cst_43 = arith.constant dense<0.000000e+00> : vector<16xf32>
    %77 = vector.multi_reduction <add>, %76, %cst_43 [1] : vector<16x128xf32> to vector<16xf32>
    %78 = vector.shape_cast %77 : vector<16xf32> to vector<16x1xf32>
    %79 = math.sqrt %78 : vector<16x1xf32>
    %cst_44 = arith.constant 9.99999996E-13 : f32
    %80 = vector.broadcast %cst_44 : f32 to vector<16x1xf32>
    %81 = arith.maximumf %79, %80 : vector<16x1xf32>
    %cst_45 = arith.constant 1.41421354 : f32
    %82 = vector.broadcast %cst_45 : f32 to vector<16x1xf32>
    %83 = arith.divf %82, %81 : vector<16x1xf32>
    %84 = vector.broadcast %83 : vector<16x1xf32> to vector<16x128xf32>
    %85 = arith.mulf %31, %84 : vector<16x128xf32>
    %86 = arith.mulf %75, %75 : vector<16x128xf32>
    %cst_46 = arith.constant dense<0.000000e+00> : vector<16xf32>
    %87 = vector.multi_reduction <add>, %86, %cst_46 [1] : vector<16x128xf32> to vector<16xf32>
    %88 = vector.shape_cast %87 : vector<16xf32> to vector<16x1xf32>
    %89 = math.sqrt %88 : vector<16x1xf32>
    %cst_47 = arith.constant 9.99999996E-13 : f32
    %90 = vector.broadcast %cst_47 : f32 to vector<16x1xf32>
    %91 = arith.maximumf %89, %90 : vector<16x1xf32>
    %cst_48 = arith.constant 1.41421354 : f32
    %92 = vector.broadcast %cst_48 : f32 to vector<16x1xf32>
    %93 = arith.divf %92, %91 : vector<16x1xf32>
    %94 = vector.broadcast %93 : vector<16x1xf32> to vector<16x128xf32>
    %95 = arith.mulf %75, %94 : vector<16x128xf32>
    %96 = arith.truncf %85 : vector<16x128xf32> to vector<16x128xbf16>
    %97 = arith.truncf %95 : vector<16x128xf32> to vector<16x128xbf16>
    %98 = arith.truncf %0 : vector<16x16xf32> to vector<16x16xbf16>
    %cst_49 = arith.constant 1.000000e+00 : f32
    %99 = vector.broadcast %cst_49 : f32 to vector<16x1xf32>
    %100 = arith.addf %3, %99 : vector<16x1xf32>
    %cst_50 = arith.constant 1.000000e+00 : f32
    %101 = vector.broadcast %cst_50 : f32 to vector<1x16xf32>
    %102 = arith.addf %5, %101 : vector<1x16xf32>
    %103 = tpu.reciprocal %100 {approx = true} : vector<16x1xf32> -> vector<16x1xf32>
    %104 = tpu.reciprocal %102 {approx = true} : vector<1x16xf32> -> vector<1x16xf32>
    %cst_51 = arith.constant dense<0.000000e+00> : vector<16x128xf32>
    %105 = tpu.matmul %98, %96, %cst_51 {dimension_numbers = #tpu.dot_dimension_numbers<[1], [0], [0], [1], [0, 0, 1, 1], [], []>} : vector<16x16xbf16>, vector<16x128xbf16>, vector<16x128xf32> -> vector<16x128xf32>
    %106 = arith.addf %105, %85 : vector<16x128xf32>
    %107 = arith.mulf %106, %95 : vector<16x128xf32>
    %cst_52 = arith.constant dense<0.000000e+00> : vector<16xf32>
    %108 = vector.multi_reduction <add>, %107, %cst_52 [1] : vector<16x128xf32> to vector<16xf32>
    %109 = vector.shape_cast %108 : vector<16xf32> to vector<16x1xf32>
    %110 = arith.mulf %109, %103 : vector<16x1xf32>
    %cst_53 = arith.constant dense<0.000000e+00> : vector<16x16xf32>
    %111 = tpu.matmul %96, %96, %cst_53 {dimension_numbers = #tpu.dot_dimension_numbers<[1], [1], [0], [0], [0, 0, 1, 0], [], []>} : vector<16x128xbf16>, vector<16x128xbf16>, vector<16x16xf32> -> vector<16x16xf32>
    %112 = math.exp %111 : vector<16x16xf32>
    %cst_54 = arith.constant dense<0.000000e+00> : vector<16xf32>
    %113 = vector.multi_reduction <add>, %112, %cst_54 [1] : vector<16x16xf32> to vector<16xf32>
    %114 = vector.shape_cast %113 : vector<16xf32> to vector<16x1xf32>
    %cst_55 = arith.constant dense<0.000000e+00> : vector<16xf32>
    %115 = vector.multi_reduction <add>, %112, %cst_55 [0] : vector<16x16xf32> to vector<16xf32>
    %116 = vector.shape_cast %115 : vector<16xf32> to vector<1x16xf32>
    %cst_56 = arith.constant dense<0.000000e+00> : vector<16x16xf32>
    %117 = tpu.matmul %97, %96, %cst_56 {dimension_numbers = #tpu.dot_dimension_numbers<[1], [1], [0], [0], [0, 0, 1, 0], [], []>} : vector<16x128xbf16>, vector<16x128xbf16>, vector<16x16xf32> -> vector<16x16xf32>
    %118 = math.exp %117 : vector<16x16xf32>
    %cst_57 = arith.constant dense<0.000000e+00> : vector<16xf32>
    %119 = vector.multi_reduction <add>, %118, %cst_57 [0] : vector<16x16xf32> to vector<16xf32>
    %120 = vector.shape_cast %119 : vector<16xf32> to vector<1x16xf32>
    %cst_58 = arith.constant 1.000000e-03 : f32
    %121 = vector.broadcast %cst_58 : f32 to vector<1x16xf32>
    %122 = arith.mulf %121, %120 : vector<1x16xf32>
    %123 = vector.broadcast %114 : vector<16x1xf32> to vector<16x16xf32>
    %124 = vector.broadcast %122 : vector<1x16xf32> to vector<16x16xf32>
    %125 = arith.addf %123, %124 : vector<16x16xf32>
    %126 = math.log %125 : vector<16x16xf32>
    %127 = arith.mulf %0, %126 : vector<16x16xf32>
    %cst_59 = arith.constant dense<0.000000e+00> : vector<16xf32>
    %128 = vector.multi_reduction <add>, %127, %cst_59 [1] : vector<16x16xf32> to vector<16xf32>
    %129 = vector.shape_cast %128 : vector<16xf32> to vector<16x1xf32>
    %130 = arith.mulf %129, %103 : vector<16x1xf32>
    %131 = arith.addf %116, %122 : vector<1x16xf32>
    %132 = math.log %131 : vector<1x16xf32>
    %133 = arith.mulf %132, %104 : vector<1x16xf32>
    %134 = vector.shape_cast %110 : vector<16x1xf32> to vector<1x16x1xf32>
    %cst_60 = arith.constant dense<0.000000e+00> : vector<1xf32>
    %135 = vector.multi_reduction <add>, %134, %cst_60 [1, 2] : vector<1x16x1xf32> to vector<1xf32>
    %136 = vector.shape_cast %135 : vector<1xf32> to vector<1x1x1xf32>
    %137 = vector.extract %136[0, 0, 0] : f32 from vector<1x1x1xf32>
    %138 = vector.broadcast %137 : f32 to vector<1x1xf32>
    %cst_61 = arith.constant 1.600000e+01 : f32
    %139 = vector.broadcast %cst_61 : f32 to vector<1x1xf32>
    %140 = arith.divf %138, %139 : vector<1x1xf32>
    %cst_62 = arith.constant 0.000000e+00 : f32
    %141 = vector.broadcast %cst_62 : f32 to vector<1x1xf32>
    %142 = arith.subf %141, %140 : vector<1x1xf32>
    %143 = vector.shape_cast %130 : vector<16x1xf32> to vector<1x16x1xf32>
    %cst_63 = arith.constant dense<0.000000e+00> : vector<1xf32>
    %144 = vector.multi_reduction <add>, %143, %cst_63 [1, 2] : vector<1x16x1xf32> to vector<1xf32>
    %145 = vector.shape_cast %144 : vector<1xf32> to vector<1x1x1xf32>
    %146 = vector.extract %145[0, 0, 0] : f32 from vector<1x1x1xf32>
    %147 = vector.broadcast %146 : f32 to vector<1x1xf32>
    %cst_64 = arith.constant 1.600000e+01 : f32
    %148 = vector.broadcast %cst_64 : f32 to vector<1x1xf32>
    %149 = arith.divf %147, %148 : vector<1x1xf32>
    %150 = vector.shape_cast %133 : vector<1x16xf32> to vector<1x1x16xf32>
    %cst_65 = arith.constant dense<0.000000e+00> : vector<1xf32>
    %151 = vector.multi_reduction <add>, %150, %cst_65 [1, 2] : vector<1x1x16xf32> to vector<1xf32>
    %152 = vector.shape_cast %151 : vector<1xf32> to vector<1x1x1xf32>
    %153 = vector.extract %152[0, 0, 0] : f32 from vector<1x1x1xf32>
    %154 = vector.broadcast %153 : f32 to vector<1x1xf32>
    %cst_66 = arith.constant 1.600000e+01 : f32
    %155 = vector.broadcast %cst_66 : f32 to vector<1x1xf32>
    %156 = arith.divf %154, %155 : vector<1x1xf32>
    %157 = arith.addf %149, %156 : vector<1x1xf32>
    %cst_67 = arith.constant 1.000000e+00 : f32
    %158 = vector.broadcast %cst_67 : f32 to vector<1x1xf32>
    %159 = arith.mulf %158, %157 : vector<1x1xf32>
    %160 = arith.addf %142, %159 : vector<1x1xf32>
    %c0_68 = arith.constant 0 : index
    %c0_69 = arith.constant 0 : index
    %161 = vector.load %arg5[%c0_68, %c0_69] : memref<1x1xf32, #tpu.memory_space<vmem>>, vector<1x1xf32>
    tpu.vector_store %arg5[%c0_68, %c0_69], %160 {strides = array<i32>} : memref<1x1xf32, #tpu.memory_space<vmem>>, vector<1x1xf32>,
    return
  }
  func.func @transform_0(%arg0: i32) -> (i32, i32) {
    %c0_i32 = arith.constant 0 : i32
    %c0_i32_0 = arith.constant 0 : i32
    %c0_i32_1 = arith.constant 0 : i32
    return %c0_i32, %c0_i32_0 : i32, i32
  }
  func.func @transform_1(%arg0: i32) -> (i32, i32) {
    %c0_i32 = arith.constant 0 : i32
    %c0_i32_0 = arith.constant 0 : i32
    %c0_i32_1 = arith.constant 0 : i32
    return %c0_i32, %c0_i32_0 : i32, i32
  }
  func.func @transform_2(%arg0: i32) -> (i32, i32, i32) {
    %c0_i32 = arith.constant 0 : i32
    %c0_i32_0 = arith.constant 0 : i32
    %c0_i32_1 = arith.constant 0 : i32
    %c0_i32_2 = arith.constant 0 : i32
    return %c0_i32, %c0_i32_0, %c0_i32_1 : i32, i32, i32
  }
  func.func @transform_3(%arg0: i32) -> (i32, i32) {
    %c0_i32 = arith.constant 0 : i32
    %c0_i32_0 = arith.constant 0 : i32
    %c0_i32_1 = arith.constant 0 : i32
    return %c0_i32, %c0_i32_0 : i32, i32
  }
  func.func @transform_4(%arg0: i32) -> (i32, i32) {
    %c0_i32 = arith.constant 0 : i32
    %c0_i32_0 = arith.constant 0 : i32
    %c0_i32_1 = arith.constant 0 : i32
    return %c0_i32, %c0_i32_0 : i32, i32
  }
}

</mosaic_0001>

<bundles_post_ra>
// kernel: model_forward.1
= control target key start
LH: loop header
LB: loop body
LE: loop exit
PB: predicated region body
PF: predicated region fallthrough
CT: control target
= control target key end

     0   :  { %9 = vsyncpa [#allocation3], 0  ;;  %s1613_s0 = inlined_call_operand.vmem [shape: f32[16,16], index: 0, kind: input, shape index: {}]   ;;  %s1614_s1 = inlined_call_operand.vmem [shape: f32[16,128], index: 1, kind: input, shape index: {}]   ;;  %s1615_s2 = inlined_call_operand.hbm [shape: f32[5,128,128], index: 2, kind: input, shape index: {}]   ;;  %s1616_s3 = inlined_call_operand.vmem [shape: f32[8,128], index: 3, kind: input, shape index: {}]   ;;  %s1617_s4 = inlined_call_operand.hbm [shape: f32[1,1], index: 4, kind: output, shape index: {}]  }
   0x1   :  { %10 = vsyncpa [#allocation4], 0  ;;  %s1479_s15 = smov [#allocation2]  }
   0x2   :  { %s20_s16 = sshll.u32 %s1479_s15, 4  ;;  %s21_s16 = int_to_ptr.vmem [resolvable:$true] %s20_s16 }
   0x3   :  { %s1443_s17 = scalar_lea.vmem %s21_s16, 10240  ;;  %p1448_p1 = scmp.lt.s32.totalorder %s21_s16, %s21_s16 }
   0x4   :  { %p1444_p0 = scmp.ne.s32.totalorder %s21_s16, %s1443_s17  ;;  %p1449_p2 = scmp.lt.s32.totalorder %s1443_s17, %s1443_s17 }
   0x6   :  { %p1450_p3 = por %p1449_p2, %p1448_p1 }
   0x8   :  { %p1451_p4 = pnand %p1450_p3, %p1444_p0 }
   0xa   :  { %1454 = shalt.err (!%p1451_p4)
}
   0xb   :  { %s1480_s18 = smov 128   ;;  %s1481_s19 = smov 8  }
   0xc   :  { %26 = dma.hbm_to_vmem [thread:$0]  %s1615_s2, 10240, %s21_s16, [#allocation3], %s1480_s18, %s1480_s18, %s1481_s19  }
   0xd   :  { %1475 = dma.done.wait [#allocation3], 10240  }
   0xe   :  { %1476 = vsyncadd [#allocation3], 4294957056  ;;  %v76_v0 = vld [vmem:[#allocation2 + $0x78] sm:$0xff]  ;;  %v75_v1 = vld [vmem:[#allocation2 + $0x70] sm:$0xff]  ;;  %vm37_vm0 = vcmask 130048   ;;  %vm1483_vm1 = vmmov 0  }
   0xf   :  { %1172 = vmatprep.subr.mxu0 %v76_v0  ;;  %v74_v2 = vld [vmem:[#allocation2 + $0x68] sm:$0xff]  ;;  %v73_v3 = vld [vmem:[#allocation2 + $0x60] sm:$0xff]  ;;  %v72_v5 = vld [vmem:[#allocation2 + $0x58] sm:$0xff]  ;;  %vm994_vm10 = vcmask 7168   ;;  %vm1024_vm11 = vcmask 122880   ;;  %s1484_s17 = smov [#allocation5]  }
  0x10   :  { %1173 = vmatpush3.msra.mxu0 %v76_v0  ;;  %v35_v4 = vld [vmem:[%s1614_s1] sm:$0xff]  ;;  %v1524_v7 = vld [vmem:[%s1613_s0 + $0x8] sm:$0xff]  ;;  %v71_v10 = vld [vmem:[#allocation2 + $0x50] sm:$0xff]  ;;  %s1047_s18 = sshll.u32 %s1484_s17, 4  ;;  %vm1039_vm12 = vcmask 0   ;;  %s1048_s18 = int_to_ptr.vmem [resolvable:$true] %s1047_s18 }
  0x11   :  { %1174 = vmatprep.subr.mxu0 %v75_v1  ;;  %1204 = vmatprep.mubr.f32.mxu0 %v35_v4  ;;  %v1519_v6 = vld [vmem:[%s1613_s0] sm:$0xff]  ;;  %v41_v9 = vsel %vm37_vm0, %v1524_v7, 0.0  ;;  %v70_v12 = vld [vmem:[#allocation2 + $0x48] sm:$0xff]  ;;  %v68_v14 = vld [vmem:[#allocation2 + $0x38] sm:$0xff]  ;;  %s1455_s19 = scalar_lea.vmem %s1048_s18, 16  ;;  %s1459_s20 = scalar_lea.vmem %s1048_s18, 32 }
  0x12   :  { %1175 = vmatpush3.msra.mxu0 %v75_v1  ;;  %v38_v8 = vsel %vm37_vm0, %v1519_v6, 0.0  ;;  %v69_v13 = vld [vmem:[#allocation2 + $0x40] sm:$0xff]  ;;  %v67_v15 = vld [vmem:[#allocation2 + $0x30] sm:$0xff]  ;;  %v66_v16 = vld [vmem:[#allocation2 + $0x28] sm:$0xff]  ;;  %p1456_p5 = scmp.ne.s32.totalorder %s1048_s18, %s1455_s19  ;;  %p1460_p6 = scmp.lt.s32.totalorder %s1048_s18, %s1048_s18 }
  0x13   :  { %1176 = vmatprep.subr.mxu0 %v74_v2  ;;  %39 = vadd.xlane.f32.xlu0 %v38_v8  ;;  %v1530_v11 = vadd.f32 %v41_v9, %v38_v8  ;;  %v65_v17 = vld [vmem:[#allocation2 + $0x20] sm:$0xff]  ;;  %v64_v18 = vld [vmem:[#allocation2 + $0x18] sm:$0xff]  ;;  %v63_v19 = vld [vmem:[#allocation2 + $0x10] sm:$0xff]  ;;  %p1461_p7 = scmp.lt.s32.totalorder %s1459_s20, %s1455_s19 }
  0x14   :  { %1177 = vmatpush3.msra.mxu0 %v74_v2  ;;  %v62_v20 = vld [vmem:[#allocation2 + $0x8] sm:$0xff]  ;;  %v61_v21 = vld [vmem:[#allocation2] sm:$0xff]  ;;  %v428_v23 = vld [vmem:[#allocation2 + $0x178] sm:$0xff] }
  0x15   :  { %1178 = vmatprep.subr.mxu0 %v73_v3  ;;  %v36_v22 = vld [vmem:[%s1614_s1 + $0x8] sm:$0xff]  ;;  %v427_v24 = vld [vmem:[#allocation2 + $0x170] sm:$0xff]  ;;  %v425_v26 = vld [vmem:[#allocation2 + $0x160] sm:$0xff]  ;;  %v45_v33 = vrot.slane %v1530_v11, 4  ;;  %p1462_p8 = por %p1461_p7, %p1460_p6 }
  0x16   :  { %1179 = vmatpush3.msra.mxu0 %v73_v3  ;;  %v426_v25 = vld [vmem:[#allocation2 + $0x168] sm:$0xff]  ;;  %v424_v27 = vld [vmem:[#allocation2 + $0x158] sm:$0xff]  ;;  %v423_v28 = vld [vmem:[#allocation2 + $0x150] sm:$0xff] }
  0x17   :  { %1180 = vmatprep.subr.mxu0 %v72_v5  ;;  %42 = vadd.xlane.f32.xlu0 %v41_v9  ;;  %v422_v29 = vld [vmem:[#allocation2 + $0x148] sm:$0xff]  ;;  %v421_v30 = vld [vmem:[#allocation2 + $0x140] sm:$0xff]  ;;  %v420_v31 = vld [vmem:[#allocation2 + $0x138] sm:$0xff]  ;;  %v46_v36 = vadd.f32 %v45_v33, %v1530_v11  ;;  %p1463_p9 = pnand %p1462_p8, %p1456_p5 }
  0x18   :  { %1181 = vmatpush3.msra.mxu0 %v72_v5  ;;  %v419_v32 = vld [vmem:[#allocation2 + $0x130] sm:$0xff]  ;;  %v418_v34 = vld [vmem:[#allocation2 + $0x128] sm:$0xff]  ;;  %v417_v35 = vld [vmem:[#allocation2 + $0x120] sm:$0xff] }
  0x19   :  { %1182 = vmatprep.subr.mxu0 %v71_v10  ;;  %v416_v37 = vld [vmem:[#allocation2 + $0x118] sm:$0xff]  ;;  %v415_v38 = vld [vmem:[#allocation2 + $0x110] sm:$0xff]  ;;  %v47_v39 = vrot.slane %v46_v36, 2  ;;  %v414_v40 = vld [vmem:[#allocation2 + $0x108] sm:$0xff] }
  0x1a   :  { %1183 = vmatpush3.msra.mxu0 %v71_v10  ;;  %v413_v41 = vld [vmem:[#allocation2 + $0x100] sm:$0xff]  ;;  %v256_v59 = vld [vmem:[#allocation2 + $0xf8] sm:$0xff]  ;;  %v255_v60 = vld [vmem:[#allocation2 + $0xf0] sm:$0xff] }
  0x1b   :  { %1184 = vmatprep.subr.mxu0 %v70_v12  ;;  %v48_v42 = vadd.f32 %v47_v39, %v46_v36  ;;  %v254_v61 = vld [vmem:[#allocation2 + $0xe8] sm:$0xff]  ;;  %v253_v62 = vld [vmem:[#allocation2 + $0xe0] sm:$0xff]  ;;  %v252_v63 = vld [vmem:[#allocation2 + $0xd8] sm:$0xff] }
  0x1c   :  { %1185 = vmatpush3.msra.mxu0 %v70_v12  ;;  %v251_v0 = vld [vmem:[#allocation2 + $0xd0] sm:$0xff]  ;;  %v250_v1 = vld [vmem:[#allocation2 + $0xc8] sm:$0xff]  ;;  %v249_v2 = vld [vmem:[#allocation2 + $0xc0] sm:$0xff] }
  0x1d   :  { %1186 = vmatprep.subr.mxu0 %v69_v13  ;;  %v49_v43 = vrot.slane %v48_v42, 1  ;;  %v248_v3 = vld [vmem:[#allocation2 + $0xb8] sm:$0xff]  ;;  %v246_v5 = vld [vmem:[#allocation2 + $0xa8] sm:$0xff]  ;;  %v245_v8 = vld [vmem:[#allocation2 + $0xa0] sm:$0xff] }
  0x1e   :  { %1187 = vmatpush3.msra.mxu0 %v69_v13  ;;  %v244_v9 = vld [vmem:[#allocation2 + $0x98] sm:$0xff]  ;;  %v243_v10 = vld [vmem:[#allocation2 + $0x90] sm:$0xff]  ;;  %v242_v11 = vld [vmem:[#allocation2 + $0x88] sm:$0xff] }
  0x1f   :  { %1188 = vmatprep.subr.mxu0 %v68_v14  ;;  %v1537_v44 = vadd.f32 %v49_v43, %v48_v42  ;;  %v241_v12 = vld [vmem:[#allocation2 + $0x80] sm:$0xff] }
  0x20   :  { %1189 = vmatpush3.msra.mxu0 %v68_v14  ;;  %v1056_v13 = vld [vmem:[%s1616_s3] ss:$0 sm:$0xff] }
  0x21   :  { %1190 = vmatprep.subr.mxu0 %v67_v15  ;;  %v55_v45 = vmax.f32 %v1537_v44, 1.0 }
  0x22   :  { %1191 = vmatpush3.msra.mxu0 %v67_v15 }
  0x23   :  { %1192 = vmatprep.subr.mxu0 %v66_v16  ;;  %1391 = vrsqrt.f32 %v55_v45 }
  0x24   :  { %1193 = vmatpush3.msra.mxu0 %v66_v16 }
  0x25   :  { %1194 = vmatprep.subr.mxu0 %v65_v17 }
  0x26   :  { %1195 = vmatpush3.msra.mxu0 %v65_v17 }
  0x27   :  { %1196 = vmatprep.subr.mxu0 %v64_v18 }
  0x28   :  { %1197 = vmatpush3.msra.mxu0 %v64_v18 }
  0x29   :  { %1198 = vmatprep.subr.mxu0 %v63_v19 }
  0x2a   :  { %1199 = vmatpush3.msra.mxu0 %v63_v19 }
  0x2b   :  { %1200 = vmatprep.subr.mxu0 %v62_v20 }
  0x2c   :  { %1201 = vmatpush3.msra.mxu0 %v62_v20 }
  0x2d   :  { %1202 = vmatprep.subr.mxu0 %v61_v21 }
  0x2e   :  { %1203 = vmatpush3.msra.mxu0 %v61_v21  ;;  %v1062_v21 = vld [vmem:[%s1616_s3 + $0x2] ss:$0 sm:$0xff] }
  0x2f   :  { %1205 = vmatmul.mubr.f32.vlgmr.msra.gmra.mxu0 %v36_v22  ;;  %1256 = vmatprep.subr.mxu0 %v428_v23 }
  0x30   :  { %1288 = vmatprep.mubr.f32.mxu0 %v35_v4  ;;  %1257 = vmatpush3.msra.mxu0 %v428_v23  ;;  %v1392_v48 = vpop.eup %1391  ;;  %v247_v4 = vld [vmem:[#allocation2 + $0xb0] sm:$0xff] }
  0x31   :  { %1258 = vmatprep.subr.mxu0 %v427_v24 }
  0x32   :  { %1259 = vmatpush3.msra.mxu0 %v427_v24 }
  0x33   :  { %1260 = vmatprep.subr.mxu0 %v426_v25 }
  0x34   :  { %1261 = vmatpush3.msra.mxu0 %v426_v25 }
  0x35   :  { %1262 = vmatprep.subr.mxu0 %v425_v26 }
  0x36   :  { %1263 = vmatpush3.msra.mxu0 %v425_v26 }
  0x37   :  { %1264 = vmatprep.subr.mxu0 %v424_v27 }
  0x38   :  { %1265 = vmatpush3.msra.mxu0 %v424_v27 }
  0x39   :  { %1266 = vmatprep.subr.mxu0 %v423_v28 }
  0x3a   :  { %1267 = vmatpush3.msra.mxu0 %v423_v28 }
  0x3b   :  { %1268 = vmatprep.subr.mxu0 %v422_v29 }
  0x3c   :  { %1269 = vmatpush3.msra.mxu0 %v422_v29 }
  0x3d   :  { %1270 = vmatprep.subr.mxu0 %v421_v30 }
  0x3e   :  { %1271 = vmatpush3.msra.mxu0 %v421_v30 }
  0x3f   :  { %1272 = vmatprep.subr.mxu0 %v420_v31 }
  0x40   :  { %1273 = vmatpush3.msra.mxu0 %v420_v31 }
  0x41   :  { %1274 = vmatprep.subr.mxu0 %v419_v32 }
  0x42   :  { %1275 = vmatpush3.msra.mxu0 %v419_v32 }
  0x43   :  { %1276 = vmatprep.subr.mxu0 %v418_v34 }
  0x44   :  { %1277 = vmatpush3.msra.mxu0 %v418_v34 }
  0x45   :  { %1278 = vmatprep.subr.mxu0 %v417_v35 }
  0x46   :  { %1279 = vmatpush3.msra.mxu0 %v417_v35 }
  0x47   :  { %1280 = vmatprep.subr.mxu0 %v416_v37 }
  0x48   :  { %1281 = vmatpush3.msra.mxu0 %v416_v37 }
  0x49   :  { %1282 = vmatprep.subr.mxu0 %v415_v38 }
  0x4a   :  { %1283 = vmatpush3.msra.mxu0 %v415_v38 }
  0x4b   :  { %1284 = vmatprep.subr.mxu0 %v414_v40 }
  0x4c   :  { %1285 = vmatpush3.msra.mxu0 %v414_v40 }
  0x4d   :  { %1286 = vmatprep.subr.mxu0 %v413_v41 }
  0x4e   :  { %1287 = vmatpush3.msra.mxu0 %v413_v41 }
  0x4f   :  { %1289 = vmatmul.mubr.f32.vlgmr.msra.gmra.mxu0 %v36_v22 }
  0x9c   :  { %v1540_v46 = vpop.xlane.xlu0 %39 }
  0x9d   :  { %v51_v47 = vmax.f32 %v1540_v46, 1.0 }
  0x9f   :  { %1393 = vrsqrt.f32 %v51_v47 }
  0xa0   :  { %v1548_v52 = vpop.xlane.xlu0 %42 }
  0xa1   :  { %v52_v53 = vmax.f32 %v1548_v52, 1.0 }
  0xa3   :  { %1395 = vrsqrt.f32 %v52_v53  ;;  %v1064_v53 = vld [vmem:[%s1616_s3 + $0x4] ss:$0 sm:$0xff] }
  0xac   :  { %v1394_v49 = vpop.eup %1393 }
  0xad   :  { %v57_v50 = vmul.f32 %v1394_v49, %v1519_v6 }
  0xaf   :  { %v1544_v51 = vmul.f32 %v1392_v48, %v57_v50  ;;  %v1063_v50 = vld [vmem:[%s1616_s3 + $0x3] ss:$0 sm:$0xff] }
  0xb0   :  { %v1396_v54 = vpop.eup %1395 }
  0xb1   :  { %1211 = vmatprep.mubr.msk.f32.mxu1 %vm37_vm0, %v1544_v51  ;;  %v58_v55 = vmul.f32 %v1396_v54, %v1524_v7 }
  0xb3   :  { %v1552_v57 = vmul.f32 %v1392_v48, %v58_v55 }
  0xef   :  { %v1206_v56 = vpop.f32.mrf.mxu0 }
  0xf0   :  { %1207 = vmatprep.subr.mxu1 %v1206_v56 }
  0xf1   :  { %v143_v58 = vpop.f32.mrf.mxu0  ;;  %1208 = vmatpush3.msra.mxu1 %v1206_v56 }
  0xf2   :  { %1209 = vmatprep.subr.mxu1 %v143_v58 }
  0xf3   :  { %1210 = vmatpush3.msra.mxu1 %v143_v58  ;;  %v566_v58 = vld [vmem:[#allocation2 + $0x1f8] sm:$0xff] }
  0xf4   :  { %1212 = vmatmul.mubr.msk.f32.vlgmr.msra.gmra.mxu1 %vm37_vm0, %v1552_v57  ;;  %1214 = vmatprep.subr.mxu1 %v256_v59 }
  0xf5   :  { %1215 = vmatpush3.msra.mxu1 %v256_v59 }
  0xf6   :  { %1216 = vmatprep.subr.mxu1 %v255_v60 }
  0xf7   :  { %1217 = vmatpush3.msra.mxu1 %v255_v60  ;;  %v565_v60 = vld [vmem:[#allocation2 + $0x1f0] sm:$0xff] }
  0xf8   :  { %1218 = vmatprep.subr.mxu1 %v254_v61 }
  0xf9   :  { %1219 = vmatpush3.msra.mxu1 %v254_v61  ;;  %v564_v61 = vld [vmem:[#allocation2 + $0x1e8] sm:$0xff] }
  0xfa   :  { %1220 = vmatprep.subr.mxu1 %v253_v62 }
  0xfb   :  { %1221 = vmatpush3.msra.mxu1 %v253_v62  ;;  %v563_v62 = vld [vmem:[#allocation2 + $0x1e0] sm:$0xff] }
  0xfc   :  { %1222 = vmatprep.subr.mxu1 %v252_v63 }
  0xfd   :  { %1223 = vmatpush3.msra.mxu1 %v252_v63  ;;  %v562_v63 = vld [vmem:[#allocation2 + $0x1d8] sm:$0xff] }
  0xfe   :  { %1224 = vmatprep.subr.mxu1 %v251_v0 }
  0xff   :  { %1225 = vmatpush3.msra.mxu1 %v251_v0  ;;  %v561_v0 = vld [vmem:[#allocation2 + $0x1d0] sm:$0xff] }
 0x100   :  { %1226 = vmatprep.subr.mxu1 %v250_v1 }
 0x101   :  { %1227 = vmatpush3.msra.mxu1 %v250_v1  ;;  %v560_v1 = vld [vmem:[#allocation2 + $0x1c8] sm:$0xff] }
 0x102   :  { %1228 = vmatprep.subr.mxu1 %v249_v2 }
 0x103   :  { %1229 = vmatpush3.msra.mxu1 %v249_v2  ;;  %v559_v2 = vld [vmem:[#allocation2 + $0x1c0] sm:$0xff] }
 0x104   :  { %1230 = vmatprep.subr.mxu1 %v248_v3 }
 0x105   :  { %1231 = vmatpush3.msra.mxu1 %v248_v3  ;;  %v557_v3 = vld [vmem:[#allocation2 + $0x1b0] sm:$0xff] }
 0x106   :  { %1232 = vmatprep.subr.mxu1 %v247_v4 }
 0x107   :  { %1233 = vmatpush3.msra.mxu1 %v247_v4  ;;  %v556_v4 = vld [vmem:[#allocation2 + $0x1a8] sm:$0xff] }
 0x108   :  { %1234 = vmatprep.subr.mxu1 %v246_v5 }
 0x109   :  { %1235 = vmatpush3.msra.mxu1 %v246_v5 }
 0x10a   :  { %1236 = vmatprep.subr.mxu1 %v245_v8 }
 0x10b   :  { %1237 = vmatpush3.msra.mxu1 %v245_v8  ;;  %v555_v8 = vld [vmem:[#allocation2 + $0x1a0] sm:$0xff] }
 0x10c   :  { %1238 = vmatprep.subr.mxu1 %v244_v9 }
 0x10d   :  { %1239 = vmatpush3.msra.mxu1 %v244_v9  ;;  %v554_v9 = vld [vmem:[#allocation2 + $0x198] sm:$0xff] }
 0x10e   :  { %1240 = vmatprep.subr.mxu1 %v243_v10 }
 0x10f   :  { %1241 = vmatpush3.msra.mxu1 %v243_v10  ;;  %v1290_v20 = vpop.f32.mrf.mxu0 }
 0x110   :  { %1242 = vmatprep.subr.mxu1 %v242_v11  ;;  %v506_v23 = vadd.f32 %v1290_v20, %v1062_v21  ;;  %v659_v20 = vld [vmem:[#allocation2 + $0x258] sm:$0xff] }
 0x111   :  { %1243 = vmatpush3.msra.mxu1 %v242_v11  ;;  %v500_v22 = vpop.f32.mrf.mxu0  ;;  %v553_v11 = vld [vmem:[#allocation2 + $0x190] sm:$0xff] }
 0x112   :  { %1244 = vmatprep.subr.mxu1 %v241_v12  ;;  %v501_v24 = vadd.f32 %v1062_v21, %v500_v22  ;;  %v658_v21 = vld [vmem:[#allocation2 + $0x250] sm:$0xff]  ;;  %v657_v22 = vld [vmem:[#allocation2 + $0x248] sm:$0xff] }
 0x113   :  { %1245 = vmatpush3.msra.mxu1 %v241_v12  ;;  %v552_v12 = vld [vmem:[#allocation2 + $0x188] sm:$0xff] }
 0x114   :  { %v509_v25 = vadd.f32 %v506_v23, %v501_v24 }
 0x116   :  { %v510_v26 = vrot.slane %v509_v25, 4 }
 0x118   :  { %v511_v27 = vadd.f32 %v510_v26, %v509_v25  ;;  %v654_v25 = vld [vmem:[#allocation2 + $0x230] sm:$0xff]  ;;  %v653_v26 = vld [vmem:[#allocation2 + $0x228] sm:$0xff] }
 0x11a   :  { %v512_v28 = vrot.slane %v511_v27, 2 }
 0x11c   :  { %v513_v29 = vadd.f32 %v512_v28, %v511_v27  ;;  %v652_v27 = vld [vmem:[#allocation2 + $0x220] sm:$0xff]  ;;  %v651_v28 = vld [vmem:[#allocation2 + $0x218] sm:$0xff] }
 0x11e   :  { %v514_v30 = vrot.slane %v513_v29, 1 }
 0x120   :  { %v515_v31 = vadd.f32 %v514_v30, %v513_v29  ;;  %v650_v29 = vld [vmem:[#allocation2 + $0x210] sm:$0xff]  ;;  %v649_v30 = vld [vmem:[#allocation2 + $0x208] sm:$0xff] }
 0x122   :  { %v517_v32 = vmul.f32 0.0625, %v515_v31  ;;  %v648_v31 = vld [vmem:[#allocation2 + $0x200] sm:$0xff] }
 0x124   :  { %v518_v33 = vsub.f32 %v501_v24, %v517_v32  ;;  %v519_v34 = vsub.f32 %v506_v23, %v517_v32  ;;  %v656_v23 = vld [vmem:[#allocation2 + $0x240] sm:$0xff]  ;;  %v655_v24 = vld [vmem:[#allocation2 + $0x238] sm:$0xff] }
 0x126   :  { %v520_v35 = vmul.f32 %v518_v33, %v518_v33  ;;  %v521_v36 = vmul.f32 %v519_v34, %v519_v34 }
 0x128   :  { %v522_v37 = vadd.f32 %v521_v36, %v520_v35 }
 0x12a   :  { %v523_v38 = vrot.slane %v522_v37, 4 }
 0x12c   :  { %v524_v39 = vadd.f32 %v523_v38, %v522_v37 }
 0x12e   :  { %v525_v40 = vrot.slane %v524_v39, 2 }
 0x130   :  { %v526_v41 = vadd.f32 %v525_v40, %v524_v39  ;;  %v1065_v40 = vld [vmem:[%s1616_s3 + $0x5] ss:$0 sm:$0xff] }
 0x132   :  { %v527_v42 = vrot.slane %v526_v41, 1 }
 0x134   :  { %v528_v43 = vadd.f32 %v527_v42, %v526_v41 }
 0x136   :  { %v529_v45 = vmul.f32 0.0625, %v528_v43 }
 0x138   :  { %v530_v47 = vadd.f32 1e-05, %v529_v45  ;;  %v1482_v45 = vmov 0.0  }
 0x13a   :  { %1397 = vrsqrt.f32 %v530_v47 }
 0x147   :  { %v1398_v48 = vpop.eup %1397 }
 0x148   :  { %v532_v49 = vmul.f32 %v1398_v48, %v518_v33  ;;  %v533_v5 = vmul.f32 %v1398_v48, %v519_v34  ;;  %v1059_v33 = vld [vmem:[%s1616_s3 + $0x1] ss:$0 sm:$0xff] }
 0x14a   :  { %v540_v10 = vmul.f32 %v1063_v50, %v533_v5  ;;  %v802_v5 = vpack.c.bf16 %v1524_v7, %v1519_v6 }
 0x1b4   :  { %v1213_v14 = vpop.f32.mrf.mxu1 }
 0x1b5   :  { %v235_v15 = vadd.f32 %v1213_v14, %v1056_v13  ;;  %v551_v14 = vld [vmem:[#allocation2 + $0x180] sm:$0xff] }
 0x1b6   :  { %v229_v16 = vpop.f32.mrf.mxu1 }
 0x1b7   :  { %v230_v17 = vadd.f32 %v1056_v13, %v229_v16  ;;  %v239_v19 = vmax.f32 %v235_v15, 0.0  ;;  %v547_v13 = vadd.f32 %v1064_v53, %v540_v10  ;;  %v663_v16 = vld [vmem:[#allocation2 + $0x278] sm:$0xff] }
 0x1b8   :  { %1326 = vmatprep.subr.mxu0 %v663_v16 }
 0x1b9   :  { %v238_v18 = vmax.f32 %v230_v17, 0.0  ;;  %v549_v15 = vmax.f32 %v547_v13, 0.0  ;;  %1327 = vmatpush3.msra.mxu0 %v663_v16  ;;  %v662_v17 = vld [vmem:[#allocation2 + $0x270] sm:$0xff] }
 0x1ba   :  { %1328 = vmatprep.subr.mxu0 %v662_v17 }
 0x1bb   :  { %1246 = vmatprep.mubr.f32.mxu1 %v238_v18  ;;  %v661_v18 = vld [vmem:[#allocation2 + $0x268] sm:$0xff]  ;;  %1329 = vmatpush3.msra.mxu0 %v662_v17 }
 0x1bc   :  { %1247 = vmatmul.mubr.f32.vlgmr.msra.gmra.mxu1 %v239_v19  ;;  %1330 = vmatprep.subr.mxu0 %v661_v18  ;;  %v660_v19 = vld [vmem:[#allocation2 + $0x260] sm:$0xff] }
 0x1bd   :  { %1253 = vmatprep.mubr.msk.f32.mxu1 %vm37_vm0, %v1544_v51  ;;  %v539_v51 = vmul.f32 %v1063_v50, %v532_v49  ;;  %1331 = vmatpush3.msra.mxu0 %v661_v18 }
 0x1be   :  { %1332 = vmatprep.subr.mxu0 %v660_v19 }
 0x1bf   :  { %v546_v55 = vadd.f32 %v1064_v53, %v539_v51  ;;  %1333 = vmatpush3.msra.mxu0 %v660_v19 }
 0x1c0   :  { %1334 = vmatprep.subr.mxu0 %v659_v20 }
 0x1c1   :  { %v548_v59 = vmax.f32 %v546_v55, 0.0  ;;  %1335 = vmatpush3.msra.mxu0 %v659_v20 }
 0x1c2   :  { %1336 = vmatprep.subr.mxu0 %v658_v21 }
 0x1c3   :  { %1337 = vmatpush3.msra.mxu0 %v658_v21 }
 0x1c4   :  { %1338 = vmatprep.subr.mxu0 %v657_v22 }
 0x1c5   :  { %1339 = vmatpush3.msra.mxu0 %v657_v22 }
 0x1c6   :  { %1340 = vmatprep.subr.mxu0 %v656_v23 }
 0x1c7   :  { %1341 = vmatpush3.msra.mxu0 %v656_v23 }
 0x1c8   :  { %1342 = vmatprep.subr.mxu0 %v655_v24 }
 0x1c9   :  { %1343 = vmatpush3.msra.mxu0 %v655_v24 }
 0x1ca   :  { %1344 = vmatprep.subr.mxu0 %v654_v25 }
 0x1cb   :  { %1345 = vmatpush3.msra.mxu0 %v654_v25 }
 0x1cc   :  { %1346 = vmatprep.subr.mxu0 %v653_v26 }
 0x1cd   :  { %1347 = vmatpush3.msra.mxu0 %v653_v26 }
 0x1ce   :  { %1348 = vmatprep.subr.mxu0 %v652_v27 }
 0x1cf   :  { %1349 = vmatpush3.msra.mxu0 %v652_v27 }
 0x1d0   :  { %1350 = vmatprep.subr.mxu0 %v651_v28 }
 0x1d1   :  { %1351 = vmatpush3.msra.mxu0 %v651_v28 }
 0x1d2   :  { %1352 = vmatprep.subr.mxu0 %v650_v29 }
 0x1d3   :  { %1353 = vmatpush3.msra.mxu0 %v650_v29 }
 0x1d4   :  { %1354 = vmatprep.subr.mxu0 %v649_v30 }
 0x1d5   :  { %1355 = vmatpush3.msra.mxu0 %v649_v30 }
 0x1d6   :  { %1356 = vmatprep.subr.mxu0 %v648_v31 }
 0x1d7   :  { %1357 = vmatpush3.msra.mxu0 %v648_v31 }
 0x27c   :  { %v1248_v54 = vpop.f32.mrf.mxu1 }
 0x27d   :  { %1249 = vmatprep.subr.mxu1 %v1248_v54 }
 0x27e   :  { %v323_v56 = vpop.f32.mrf.mxu1  ;;  %1250 = vmatpush3.msra.mxu1 %v1248_v54 }
 0x27f   :  { %1251 = vmatprep.subr.mxu1 %v323_v56 }
 0x280   :  { %1252 = vmatpush3.msra.mxu1 %v323_v56 }
 0x281   :  { %1254 = vmatmul.mubr.msk.f32.vlgmr.msra.gmra.mxu1 %vm37_vm0, %v1552_v57  ;;  %1291 = vmatprep.subr.mxu1 %v566_v58  ;;  %v558_v57 = vld [vmem:[#allocation2 + $0x1b8] sm:$0xff] }
 0x282   :  { %1292 = vmatpush3.msra.mxu1 %v566_v58  ;;  %1323 = vmatprep.mubr.f32.mxu1 %v548_v59 }
 0x283   :  { %1293 = vmatprep.subr.mxu1 %v565_v60 }
 0x284   :  { %1294 = vmatpush3.msra.mxu1 %v565_v60 }
 0x285   :  { %1295 = vmatprep.subr.mxu1 %v564_v61 }
 0x286   :  { %1296 = vmatpush3.msra.mxu1 %v564_v61 }
 0x287   :  { %1297 = vmatprep.subr.mxu1 %v563_v62 }
 0x288   :  { %1298 = vmatpush3.msra.mxu1 %v563_v62 }
 0x289   :  { %1299 = vmatprep.subr.mxu1 %v562_v63 }
 0x28a   :  { %1300 = vmatpush3.msra.mxu1 %v562_v63 }
 0x28b   :  { %1301 = vmatprep.subr.mxu1 %v561_v0 }
 0x28c   :  { %1302 = vmatpush3.msra.mxu1 %v561_v0 }
 0x28d   :  { %1303 = vmatprep.subr.mxu1 %v560_v1 }
 0x28e   :  { %1304 = vmatpush3.msra.mxu1 %v560_v1 }
 0x28f   :  { %1305 = vmatprep.subr.mxu1 %v559_v2 }
 0x290   :  { %1306 = vmatpush3.msra.mxu1 %v559_v2 }
 0x291   :  { %1307 = vmatprep.subr.mxu1 %v558_v57 }
 0x292   :  { %1308 = vmatpush3.msra.mxu1 %v558_v57 }
 0x293   :  { %1309 = vmatprep.subr.mxu1 %v557_v3 }
 0x294   :  { %1310 = vmatpush3.msra.mxu1 %v557_v3 }
 0x295   :  { %1311 = vmatprep.subr.mxu1 %v556_v4 }
 0x296   :  { %1312 = vmatpush3.msra.mxu1 %v556_v4 }
 0x297   :  { %1313 = vmatprep.subr.mxu1 %v555_v8 }
 0x298   :  { %1314 = vmatpush3.msra.mxu1 %v555_v8  ;;  %v1066_v8 = vld [vmem:[%s1616_s3 + $0x6] ss:$0 sm:$0xff] }
 0x299   :  { %1315 = vmatprep.subr.mxu1 %v554_v9 }
 0x29a   :  { %1316 = vmatpush3.msra.mxu1 %v554_v9 }
 0x29b   :  { %1317 = vmatprep.subr.mxu1 %v553_v11 }
 0x29c   :  { %1318 = vmatpush3.msra.mxu1 %v553_v11 }
 0x29d   :  { %1319 = vmatprep.subr.mxu1 %v552_v12 }
 0x29e   :  { %1320 = vmatpush3.msra.mxu1 %v552_v12 }
 0x29f   :  { %1321 = vmatprep.subr.mxu1 %v551_v14 }
 0x2a0   :  { %1322 = vmatpush3.msra.mxu1 %v551_v14 }
 0x2a1   :  { %1324 = vmatmul.mubr.f32.vlgmr.msra.gmra.mxu1 %v549_v15  ;;  %1361 = vmatprep.subr.bf16.mxu1 %v1482_v45 }
 0x2a2   :  { %1363 = vmatprep.mubr.msk.bf16.mxu1 %vm1483_vm1, %v1482_v45 }
 0x341   :  { %v1255_v32 = vpop.f32.mrf.mxu1 }
 0x342   :  { %v409_v36 = vadd.f32 %v1255_v32, %v1059_v33 }
 0x343   :  { %v403_v34 = vpop.f32.mrf.mxu1 }
 0x344   :  { %v404_v35 = vadd.f32 %v1059_v33, %v403_v34  ;;  %v745_v38 = vmul.f32 %v409_v36, %v409_v36 }
 0x346   :  { %v744_v37 = vmul.f32 %v404_v35, %v404_v35 }
 0x348   :  { %746 = vadd.xlane.f32.xlu1 %v744_v37 }
 0x34c   :  { %748 = vadd.xlane.f32.xlu1 %v745_v38 }
 0x361   :  { %v1325_v39 = vpop.f32.mrf.mxu1 }
 0x362   :  { %v644_v43 = vadd.f32 %v1325_v39, %v1065_v40 }
 0x363   :  { %v638_v41 = vpop.f32.mrf.mxu1 }
 0x364   :  { %v639_v42 = vadd.f32 %v1065_v40, %v638_v41 }
 0x366   :  { %1358 = vmatprep.mubr.f32.mxu0 %v639_v42 }
 0x367   :  { %1359 = vmatmul.mubr.f32.vlgmr.msra.gmra.mxu0 %v644_v43 }
 0x3d1   :  { %v747_v47 = vpop.xlane.xlu1 %746 }
 0x3d2   :  { %1399 = vrsqrt.f32 %v747_v47  ;;  %vm752_vm2 = vcmp.eq.f32.partialorder %v747_v47, inf  ;;  %v755_v51 = vand.u32 2147483648, %v747_v47  ;;  %vm754_vm3 = vcmp.eq.f32.partialorder %v747_v47, 0.0 }
 0x3d5   :  { %v749_v48 = vpop.xlane.xlu1 %748 }
 0x3d6   :  { %1401 = vrsqrt.f32 %v749_v48  ;;  %vm759_vm4 = vcmp.eq.f32.partialorder %v749_v48, inf  ;;  %v762_v59 = vand.u32 2147483648, %v749_v48  ;;  %vm761_vm5 = vcmp.eq.f32.partialorder %v749_v48, 0.0 }
 0x3df   :  { %v1400_v49 = vpop.eup %1399 }
 0x3e0   :  { %v751_v50 = vmul.f32 %v1400_v49, %v747_v47 }
 0x3e2   :  { %v753_v53 = vsel %vm752_vm2, %v747_v47, %v751_v50 }
 0x3e3   :  { %v1402_v54 = vpop.eup %1401  ;;  %v756_v55 = vsel %vm754_vm3, %v755_v51, %v753_v53 }
 0x3e4   :  { %v764_v56 = vmax.f32 %v756_v55, 1e-12  ;;  %v758_v58 = vmul.f32 %v1402_v54, %v749_v48 }
 0x3e6   :  { %1403 = vrcp.f32 %v764_v56  ;;  %v760_v60 = vsel %vm759_vm4, %v749_v48, %v758_v58 }
 0x3e7   :  { %v763_v61 = vsel %vm761_vm5, %v762_v59, %v760_v60 }
 0x3e8   :  { %v765_v62 = vmax.f32 %v763_v61, 1e-12 }
 0x3ea   :  { %1405 = vrcp.f32 %v765_v62 }
 0x3f3   :  { %v1404_v63 = vpop.eup %1403 }
 0x3f4   :  { %v767_v0 = vmul.f32 1.4142135, %v1404_v63 }
 0x3f6   :  { %v1579_v57 = vmul.f32 %v767_v0, %v404_v35 }
 0x3f7   :  { %v1406_v1 = vpop.eup %1405 }
 0x3f8   :  { %v769_v2 = vmul.f32 1.4142135, %v1406_v1 }
 0x3fa   :  { %v1581_v3 = vmul.f32 %v769_v2, %v409_v36 }
 0x3fc   :  { %v800_v4 = vpack.c.bf16 %v1581_v3, %v1579_v57 }
 0x3fe   :  { %1362 = vmatpush3.bf16.msra.mxu1 %v800_v4 }
 0x3ff   :  { %1367 = vmatprep.subr.bf16.mxu1 %v1482_v45 }
 0x401   :  { %1364 = vmatmul.mubr.msk.bf16.vlgmr.msra.gmra.mxu1 %vm37_vm0, %v802_v5 }
 0x402   :  { %1368 = vmatpush3.bf16.xpose.msra.mxu1 %v800_v4  ;;  %1369 = vmatprep.mubr.msk.bf16.mxu1 %vm1483_vm1, %v1482_v45 }
 0x403   :  { %1373 = vmatprep.subr.bf16.mxu1 %v1482_v45 }
 0x409   :  { %1370 = vmatmul.mubr.bf16.vlgmr.msra.gmra.mxu1 %v800_v4 }
 0x40a   :  { %1374 = vmatpush3.bf16.xpose.msra.mxu1 %v800_v4  ;;  %1375 = vmatprep.mubr.msk.bf16.mxu1 %vm1483_vm1, %v1482_v45 }
 0x427   :  { %v1360_v9 = vpop.f32.mrf.mxu0 }
 0x428   :  { %v741_v10 = vadd.f32 %v1360_v9, %v1066_v8 }
 0x429   :  { %v735_v11 = vpop.f32.mrf.mxu0 }
 0x42a   :  { %v736_v12 = vadd.f32 %v1066_v8, %v735_v11  ;;  %v773_v13 = vmul.f32 %v741_v10, %v741_v10 }
 0x42c   :  { %776 = vadd.xlane.f32.xlu1 %v773_v13  ;;  %v772_v14 = vmul.f32 %v736_v12, %v736_v12 }
 0x42e   :  { %774 = vadd.xlane.f32.xlu0 %v772_v14 }
 0x4b5   :  { %v777_v15 = vpop.xlane.xlu1 %776 }
 0x4b6   :  { %1407 = vrsqrt.f32 %v777_v15  ;;  %vm787_vm6 = vcmp.eq.f32.partialorder %v777_v15, inf  ;;  %v790_v22 = vand.u32 2147483648, %v777_v15  ;;  %vm789_vm7 = vcmp.eq.f32.partialorder %v777_v15, 0.0 }
 0x4b7   :  { %v775_v16 = vpop.xlane.xlu0 %774 }
 0x4b8   :  { %1409 = vrsqrt.f32 %v775_v16  ;;  %vm780_vm8 = vcmp.eq.f32.partialorder %v775_v16, inf  ;;  %v783_v26 = vand.u32 2147483648, %v775_v16  ;;  %vm782_vm9 = vcmp.eq.f32.partialorder %v775_v16, 0.0 }
 0x4c1   :  { %v846_v17 = vpop.f32.mrf.mxu1 }
 0x4c2   :  { %v847_v48 = vadd.f32 %v846_v17, %v1579_v57  ;;  %v805_v17 = vadd.f32 1.0, %v1537_v44 }
 0x4c3   :  { %v1408_v18 = vpop.eup %1407  ;;  %v1365_v19 = vpop.f32.mrf.mxu1 }
 0x4c4   :  { %v786_v20 = vmul.f32 %v1408_v18, %v777_v15  ;;  %v803_v18 = vadd.f32 1.0, %v1540_v46 }
 0x4c5   :  { %v1410_v21 = vpop.eup %1409  ;;  %v849_v23 = vpop.f32.mrf.mxu1 }
 0x4c6   :  { %v788_v24 = vsel %vm787_vm6, %v777_v15, %v786_v20  ;;  %v779_v25 = vmul.f32 %v1410_v21, %v775_v16  ;;  %v850_v53 = vadd.f32 %v849_v23, %v1581_v3  ;;  %v804_v20 = vadd.f32 1.0, %v1548_v52 }
 0x4c7   :  { %v1366_v27 = vpop.f32.mrf.mxu1  ;;  %v791_v28 = vsel %vm789_vm7, %v790_v22, %v788_v24 }
 0x4c8   :  { %v781_v29 = vsel %vm780_vm8, %v775_v16, %v779_v25  ;;  %v793_v30 = vmax.f32 %v791_v28, 1e-12 }
 0x4c9   :  { %v895_v31 = vpop.f32.mrf.mxu1  ;;  %v784_v32 = vsel %vm782_vm9, %v783_v26, %v781_v29 }
 0x4ca   :  { %v902_v33 = vmul.f32 1.442695, %v895_v31  ;;  %v792_v34 = vmax.f32 %v784_v32, 1e-12  ;;  %1411 = vrcp.f32 %v793_v30 }
 0x4cb   :  { %v1371_v35 = vpop.f32.mrf.mxu1 }
 0x4cc   :  { %1413 = vpow2.f32 %v902_v33 }
 0x4cd   :  { %v898_v36 = vpop.f32.mrf.mxu1  ;;  %1415 = vrcp.f32 %v792_v34 }
 0x4ce   :  { %v904_v37 = vmul.f32 1.442695, %v898_v36 }
 0x4cf   :  { %v1372_v38 = vpop.f32.mrf.mxu1 }
 0x4d0   :  { %1417 = vpow2.f32 %v904_v37 }
 0x4d7   :  { %v1412_v39 = vpop.eup %1411 }
 0x4d8   :  { %v797_v41 = vmul.f32 1.4142135, %v1412_v39 }
 0x4d9   :  { %v1414_v40 = vpop.eup %1413 }
 0x4da   :  { %v1416_v42 = vpop.eup %1415  ;;  %v906_v43 = vsel %vm37_vm0, %v1414_v40, 0.0  ;;  %v799_v50 = vmul.f32 %v797_v41, %v741_v10 }
 0x4db   :  { %907 = vadd.xlane.f32.xlu0 %v906_v43  ;;  %v795_v45 = vmul.f32 1.4142135, %v1416_v42 }
 0x4dc   :  { %v854_v58 = vmul.f32 %v850_v53, %v799_v50 }
 0x4dd   :  { %v1418_v47 = vpop.eup %1417  ;;  %v798_v49 = vmul.f32 %v795_v45, %v736_v12 }
 0x4de   :  { %v909_v51 = vsel %vm37_vm0, %v1418_v47, 0.0 }
 0x4df   :  { %910 = vadd.xlane.f32.xlu1 %v909_v51  ;;  %v912_v54 = vadd.f32 %v909_v51, %v906_v43  ;;  %v853_v55 = vmul.f32 %v847_v48, %v798_v49  ;;  %v801_v56 = vpack.c.bf16 %v799_v50, %v798_v49 }
 0x4e1   :  { %855 = vadd.xlane.f32.xlu0 %v853_v55  ;;  %1376 = vmatmul.mubr.bf16.vlgmr.msra.gmra.mxu1 %v801_v56  ;;  %v913_v1 = vrot.slane %v912_v54, 4 }
 0x4e3   :  { %857 = vadd.xlane.f32.xlu1 %v854_v58  ;;  %v914_v3 = vadd.f32 %v913_v1, %v912_v54 }
 0x4e5   :  { %v915_v9 = vrot.slane %v914_v3, 2 }
 0x4e7   :  { %v916_v12 = vadd.f32 %v915_v9, %v914_v3 }
 0x4e9   :  { %v917_v15 = vrot.slane %v916_v12, 1 }
 0x4eb   :  { %v918_v21 = vadd.f32 %v917_v15, %v916_v12 }
 0x564   :  { %v908_v23 = vpop.xlane.xlu0 %907 }
 0x568   :  { %v911_v24 = vpop.xlane.xlu1 %910 }
 0x56a   :  { %v856_v31 = vpop.xlane.xlu0 %855 }
 0x56c   :  { %v858_v29 = vpop.xlane.xlu1 %857 }
 0x5a1   :  { %v953_v59 = vpop.f32.mrf.mxu1 }
 0x5a2   :  { %v960_v60 = vmul.f32 1.442695, %v953_v59 }
 0x5a3   :  { %v1377_v61 = vpop.f32.mrf.mxu1 }
 0x5a4   :  { %1419 = vpow2.f32 %v960_v60 }
 0x5a5   :  { %v956_v62 = vpop.f32.mrf.mxu1 }
 0x5a6   :  { %v962_v63 = vmul.f32 1.442695, %v956_v62 }
 0x5a7   :  { %v1378_v0 = vpop.f32.mrf.mxu1 }
 0x5a8   :  { %1421 = vpow2.f32 %v962_v63 }
 0x5a9   :  { %1423 = vrcp.f32 %v805_v17 }
 0x5aa   :  { %1425 = vrcp.f32 %v803_v18 }
 0x5ab   :  { %1427 = vrcp.f32 %v804_v20 }
 0x5b1   :  { %v1420_v2 = vpop.eup %1419 }
 0x5b2   :  { %v964_v4 = vsel %vm37_vm0, %v1420_v2, 0.0 }
 0x5b5   :  { %v1422_v57 = vpop.eup %1421 }
 0x5b6   :  { %v965_v5 = vsel %vm37_vm0, %v1422_v57, 0.0  ;;  %v1424_v28 = vpop.eup %1423 }
 0x5b7   :  { %v966_v8 = vadd.f32 %v965_v5, %v964_v4  ;;  %v1426_v44 = vpop.eup %1425 }
 0x5b8   :  { %v1428_v46 = vpop.eup %1427  ;;  %v859_v36 = vmul.f32 %v1426_v44, %v856_v31 }
 0x5b9   :  { %v967_v10 = vrot.slane %v966_v8, 4  ;;  %v860_v32 = vmul.f32 %v1428_v46, %v858_v29 }
 0x5ba   :  { %v995_v45 = vsel %vm994_vm10, %v859_v36, 0.0 }
 0x5bb   :  { %v968_v11 = vadd.f32 %v967_v10, %v966_v8  ;;  %v996_v41 = vsel %vm994_vm10, %v860_v32, 0.0 }
 0x5bc   :  { %v997_v47 = vadd.f32 %v996_v41, %v995_v45 }
 0x5bd   :  { %v969_v13 = vrot.slane %v968_v11, 2 }
 0x5bf   :  { %v970_v14 = vadd.f32 %v969_v13, %v968_v11 }
 0x5c1   :  { %v971_v16 = vrot.slane %v970_v14, 1 }
 0x5c3   :  { %v972_v19 = vadd.f32 %v971_v16, %v970_v14 }
 0x5c5   :  { %v973_v22 = vmul.f32 0.001, %v972_v19 }
 0x5c7   :  { %v974_v25 = vadd.f32 %v973_v22, %v908_v23  ;;  %v975_v26 = vadd.f32 %v973_v22, %v911_v24  ;;  %v990_v27 = vadd.f32 %v973_v22, %v918_v21 }
 0x5c9   :  { %1429 = vlog2.f32 %v974_v25 }
 0x5ca   :  { %1431 = vlog2.f32 %v975_v26 }
 0x5cb   :  { %1433 = vlog2.f32 %v990_v27 }
 0x5d6   :  { %v1430_v30 = vpop.eup %1429 }
 0x5d7   :  { %v1432_v52 = vpop.eup %1431  ;;  %v977_v33 = vmul.f32 0.6931472, %v1430_v30 }
 0x5d8   :  { %v1434_v34 = vpop.eup %1433  ;;  %v979_v35 = vmul.f32 0.6931472, %v1432_v52 }
 0x5d9   :  { %v980_v37 = vmul.f32 %v977_v33, %v1519_v6  ;;  %v992_v38 = vmul.f32 0.6931472, %v1434_v34 }
 0x5da   :  { %v981_v39 = vmul.f32 %v979_v35, %v1524_v7 }
 0x5db   :  { %v982_v40 = vsel %vm37_vm0, %v980_v37, 0.0  ;;  %v993_v42 = vmul.f32 %v1424_v28, %v992_v38 }
 0x5dc   :  { %983 = vadd.xlane.f32.xlu0 %v982_v40  ;;  %v985_v43 = vsel %vm37_vm0, %v981_v39, 0.0 }
 0x5dd   :  { %986 = vadd.xlane.f32.xlu1 %v985_v43  ;;  %v1025_v48 = vsel %vm1024_vm11, %v993_v42, 0.0 }
 0x5e0   :  { %998 = vadd.xlane.f32.xlu0 %v997_v47 }
 0x5e4   :  { %1026 = vadd.xlane.f32.xlu0 %v1025_v48 }
 0x665   :  { %v984_v6 = vpop.xlane.xlu0 %983 }
 0x666   :  { %v988_v49 = vmul.f32 %v1426_v44, %v984_v6  ;;  %v987_v7 = vpop.xlane.xlu1 %986 }
 0x667   :  { %v989_v50 = vmul.f32 %v1428_v46, %v987_v7 }
 0x668   :  { %v1010_v51 = vsel %vm994_vm10, %v988_v49, 0.0 }
 0x669   :  { %v999_v53 = vpop.xlane.xlu0 %998  ;;  %v1011_v54 = vsel %vm994_vm10, %v989_v50, 0.0 }
 0x66a   :  { %v1000_v55 = vrot.slane %v999_v53, 4  ;;  %v1012_v56 = vadd.f32 %v1011_v54, %v1010_v51 }
 0x66c   :  { %v1001_v58 = vadd.f32 %v1000_v55, %v999_v53  ;;  %1013 = vadd.xlane.f32.xlu1 %v1012_v56 }
 0x66d   :  { %v1027_v63 = vpop.xlane.xlu0 %1026 }
 0x66e   :  { %v1002_v59 = vrot.slane %v1001_v58, 2  ;;  %v1028_v0 = vrot.slane %v1027_v63, 4 }
 0x670   :  { %v1003_v60 = vadd.f32 %v1002_v59, %v1001_v58  ;;  %v1029_v1 = vadd.f32 %v1028_v0, %v1027_v63 }
 0x672   :  { %v1004_v61 = vrot.slane %v1003_v60, 1  ;;  %v1030_v2 = vrot.slane %v1029_v1, 2 }
 0x674   :  { %v1005_v62 = vadd.f32 %v1004_v61, %v1003_v60  ;;  %v1031_v5 = vadd.f32 %v1030_v2, %v1029_v1 }
 0x676   :  { %1379 = vpush %v1005_v62  ;;  %v1032_v10 = vrot.slane %v1031_v5, 1 }
 0x678   :  { %v1033_v13 = vadd.f32 %v1032_v10, %v1031_v5 }
 0x6a7   :  { %s1380_s3 = spop %1379 }
 0x6a8   :  { %v1007_v14 = vstv %s1380_s3 }
 0x6a9   :  { %v1008_v15 = vmul.f32 0.0625, %v1007_v14 }
 0x6ab   :  { %v1009_v20 = vsub.f32 0.0, %v1008_v15 }
 0x6f5   :  { %v1014_v57 = vpop.xlane.xlu1 %1013 }
 0x6f6   :  { %v1015_v3 = vrot.slane %v1014_v57, 4 }
 0x6f8   :  { %v1016_v4 = vadd.f32 %v1015_v3, %v1014_v57 }
 0x6fa   :  { %v1017_v8 = vrot.slane %v1016_v4, 2 }
 0x6fc   :  { %v1018_v9 = vadd.f32 %v1017_v8, %v1016_v4 }
 0x6fe   :  { %v1019_v11 = vrot.slane %v1018_v9, 1 }
 0x700   :  { %v1020_v12 = vadd.f32 %v1019_v11, %v1018_v9 }
 0x702   :  { %1381 = vpush %v1020_v12 }
 0x703   :  { %1383 = vpush %v1033_v13 }
 0x733   :  { %s1382_s15 = spop %1381 }
 0x734   :  { %v1022_v16 = vstv %s1382_s15  ;;  %s1384_s16 = spop %1383 }
 0x735   :  { %v1023_v17 = vmul.f32 0.0625, %v1022_v16  ;;  %v1035_v18 = vstv %s1384_s16 }
 0x736   :  { %v1036_v19 = vmul.f32 0.0625, %v1035_v18 }
 0x738   :  { %v1037_v21 = vadd.f32 %v1036_v19, %v1023_v17 }
 0x73a   :  { %v1038_v22 = vadd.f32 %v1037_v21, %v1009_v20 }
 0x73c   :  { %1040 = vst.msk [vmem:[#allocation5] sm:$0x1] %vm1039_vm12, %v1038_v22 }
 0x73d   :  { %1466 = shalt.err (!%p1463_p9)
}
 0x73e   :  { %1050 = dma.vmem_to_hbm [thread:$0]  %s1048_s18, 16, %s1617_s4, [#allocation4]  }
 0x73f   :  { %1477 = dma.done.wait [#allocation4], 16  }
 0x740   :  { %1478 = vsyncadd [#allocation4], 4294967280 }
 0x741   :  { %1054 = vsyncpa [#allocation3], 1 }
 0x742   :  { %1055 = vsyncpa [#allocation4], 1 }

</bundles_post_ra>
